<compile_context>
chip_gen: v7x
topology: tpu7x:2x2x1
jax: 0.10.0
libtpu: 0.0.40
codegen_flags: <defaults>
</compile_context>

<pallas_src>
import jax
import jax.numpy as jnp
from jax import lax
from jax.experimental import pallas as pl
from jax.experimental.pallas import tpu as pltpu


def _round_up(x, m):
    return (x + m - 1) // m * m


def _autoencoder_kernel(x_ref, w_enc_ref, b_enc_ref, w_dec_ref, b_dec_ref,
                        out_ref, emb_ref):
    x = x_ref[...]                                     # [TB, in_p]

    # Encoder: x [TB, in] . w_enc [hid, in] contracting on the 'in' axis.
    h = lax.dot_general(
        x, w_enc_ref[...],
        dimension_numbers=(((1,), (1,)), ((), ())),
        preferred_element_type=jnp.float32,
    )                                                  # [TB, hid_p] f32
    emb = jnp.tanh(h + b_enc_ref[...])                 # f32 tanh (EUP)
    emb_ref[...] = emb.astype(emb_ref.dtype)

    # Decoder: emb [TB, hid] . w_dec [in, hid] contracting on the 'hid' axis.
    out = lax.dot_general(
        emb.astype(x.dtype), w_dec_ref[...],
        dimension_numbers=(((1,), (1,)), ((), ())),
        preferred_element_type=jnp.float32,
    ) + b_dec_ref[...]                                 # [TB, in_p] f32
    out_ref[...] = out.astype(out_ref.dtype)


def naive_autoencoder_forward(x, w_enc, b_enc, w_dec, b_dec, *, block_b=256):
    """x: [B, in_feature]; w_enc: [hid, in] (PyTorch layout); b_enc: [hid];
    w_dec: [in, hid]; b_dec: [in]. Returns (out [B, in], emb [B, hid])."""
    B, in_f = x.shape
    hid_f = w_enc.shape[0]
    dtype = x.dtype
    dtype_bytes = jnp.dtype(dtype).itemsize

    # Lane-dense feature dims; batch tiled at TB rows (sublane-aligned).
    in_p = _round_up(in_f, 128)
    hid_p = _round_up(hid_f, 128)
    TB = min(block_b, _round_up(B, 8))
    B_p = _round_up(B, TB)
    nb = B_p // TB

    # Zero-pad (zeros keep valid outputs exact; padded cols sliced off below).
    x_p = jnp.pad(x, ((0, B_p - B), (0, in_p - in_f)))
    w_enc_p = jnp.pad(w_enc, ((0, hid_p - hid_f), (0, in_p - in_f)))
    w_dec_p = jnp.pad(w_dec, ((0, in_p - in_f), (0, hid_p - hid_f)))
    b_enc_p = jnp.pad(b_enc, (0, hid_p - hid_f)).reshape(1, hid_p)
    b_dec_p = jnp.pad(b_dec, (0, in_p - in_f)).reshape(1, in_p)

    # VMEM budget: resident weights + biases + double-buffered batch tiles.
    vmem_est = (
        2 * in_p * hid_p * dtype_bytes               # resident weight matrices
        + (in_p + hid_p) * dtype_bytes               # resident biases
        + 2 * TB * (2 * in_p + hid_p) * dtype_bytes  # 2-deep x/out/emb tiles
        + TB * (in_p + hid_p) * 4                    # f32 intermediates
    )
    vmem_limit = int(min(max(2 * vmem_est, 32 * 1024 * 1024), 64 * 1024 * 1024))

    cost = pl.CostEstimate(
        flops=2 * B_p * in_p * hid_p * 2,
        transcendentals=B_p * hid_p,
        bytes_accessed=(B_p * in_p * 2 + B_p * hid_p
                        + 2 * in_p * hid_p + in_p + hid_p) * dtype_bytes,
    )

    out_p, emb_p = pl.pallas_call(
        _autoencoder_kernel,
        out_shape=(
            jax.ShapeDtypeStruct((B_p, in_p), dtype),
            jax.ShapeDtypeStruct((B_p, hid_p), dtype),
        ),
        grid=(nb,),
        in_specs=[
            pl.BlockSpec((TB, in_p), lambda i: (i, 0)),      # x tile
            pl.BlockSpec((hid_p, in_p), lambda i: (0, 0)),   # w_enc (resident)
            pl.BlockSpec((1, hid_p), lambda i: (0, 0)),      # b_enc (resident)
            pl.BlockSpec((in_p, hid_p), lambda i: (0, 0)),   # w_dec (resident)
            pl.BlockSpec((1, in_p), lambda i: (0, 0)),       # b_dec (resident)
        ],
        out_specs=(
            pl.BlockSpec((TB, in_p), lambda i: (i, 0)),      # out tile
            pl.BlockSpec((TB, hid_p), lambda i: (i, 0)),     # emb tile
        ),
        compiler_params=pltpu.CompilerParams(
            dimension_semantics=("parallel",),
            vmem_limit_bytes=vmem_limit,
        ),
        cost_estimate=cost,
    )(x_p, w_enc_p, b_enc_p, w_dec_p, b_dec_p)

    # Strip padding.
    out = out_p[:B, :in_f]
    emb = emb_p[:B, :hid_f]
    return out, emb


def init_params(key, in_feature, hid_feature, dtype=jnp.float32):
    """Deterministic init mimicking nn.Linear default (uniform +/- 1/sqrt(fan_in))."""
    k1, k2, k3, k4 = jax.random.split(key, 4)
    bound_enc = 1.0 / jnp.sqrt(in_feature)
    bound_dec = 1.0 / jnp.sqrt(hid_feature)
    w_enc = jax.random.uniform(k1, (hid_feature, in_feature), dtype,
                               minval=-bound_enc, maxval=bound_enc)
    b_enc = jax.random.uniform(k2, (hid_feature,), dtype,
                               minval=-bound_enc, maxval=bound_enc)
    w_dec = jax.random.uniform(k3, (in_feature, hid_feature), dtype,
                               minval=-bound_dec, maxval=bound_dec)
    b_dec = jax.random.uniform(k4, (in_feature,), dtype,
                               minval=-bound_dec, maxval=bound_dec)
    return w_enc, b_enc, w_dec, b_dec


if __name__ == "__main__":
    B, in_feature, hid_feature = 8, 64, 32

    key = jax.random.PRNGKey(0)
    kx, kp = jax.random.split(key)
    x = jax.random.normal(kx, (B, in_feature), jnp.float32)
    w_enc, b_enc, w_dec, b_dec = init_params(kp, in_feature, hid_feature)

    fwd = jax.jit(naive_autoencoder_forward)
    out, emb = fwd(x, w_enc, b_enc, w_dec, b_dec)
    jax.block_until_ready((out, emb))

    # Pure-JAX reference check
    emb_ref = jnp.tanh(x @ w_enc.T + b_enc)
    out_ref = emb_ref @ w_dec.T + b_dec
    assert out.shape == (B, in_feature) and emb.shape == (B, hid_feature)
    assert jnp.allclose(emb, emb_ref, atol=1e-5)
    assert jnp.allclose(out, out_ref, atol=1e-5)

    print("KERNEL_OK")
</pallas_src>

<mosaic_0001>
module attributes {stable_mosaic.version = 11 : i64} {
  func.func @_autoencoder_kernel(%arg0: i32, %arg1: memref<8x128xf32, #tpu.memory_space<vmem>>, %arg2: memref<128x128xf32, #tpu.memory_space<vmem>>, %arg3: memref<1x128xf32, #tpu.memory_space<vmem>>, %arg4: memref<128x128xf32, #tpu.memory_space<vmem>>, %arg5: memref<1x128xf32, #tpu.memory_space<vmem>>, %arg6: memref<8x128xf32, #tpu.memory_space<vmem>>, %arg7: memref<8x128xf32, #tpu.memory_space<vmem>>) attributes {dimension_semantics = [#tpu.dimension_semantics<parallel>], iteration_bounds = array<i64: 1>, scalar_prefetch = 0 : i64, scratch_operands = 0 : i64, tpu.core_type = #tpu.core_type<tc>, window_params = [{transform_indices = @transform_0, window_bounds = array<i64: 8, 128>}, {pipeline_mode = #tpu.pipeline_mode<synchronous>, transform_indices = @transform_1, window_bounds = array<i64: 128, 128>}, {pipeline_mode = #tpu.pipeline_mode<synchronous>, transform_indices = @transform_2, window_bounds = array<i64: 1, 128>}, {pipeline_mode = #tpu.pipeline_mode<synchronous>, transform_indices = @transform_3, window_bounds = array<i64: 128, 128>}, {pipeline_mode = #tpu.pipeline_mode<synchronous>, transform_indices = @transform_4, window_bounds = array<i64: 1, 128>}, {transform_indices = @transform_5, window_bounds = array<i64: 8, 128>}, {transform_indices = @transform_6, window_bounds = array<i64: 8, 128>}]} {
    %c0 = arith.constant 0 : index
    %c0_0 = arith.constant 0 : index
    %0 = vector.load %arg1[%c0, %c0_0] : memref<8x128xf32, #tpu.memory_space<vmem>>, vector<8x128xf32>
    %c0_1 = arith.constant 0 : index
    %c0_2 = arith.constant 0 : index
    %1 = vector.load %arg2[%c0_1, %c0_2] : memref<128x128xf32, #tpu.memory_space<vmem>>, vector<128x128xf32>
    %cst = arith.constant dense<0.000000e+00> : vector<8x128xf32>
    %2 = tpu.matmul %0, %1, %cst {dimension_numbers = #tpu.dot_dimension_numbers<[1], [1], [0], [0], [0, 0, 1, 0], [], []>} : vector<8x128xf32>, vector<128x128xf32>, vector<8x128xf32> -> vector<8x128xf32>
    %c0_3 = arith.constant 0 : index
    %c0_4 = arith.constant 0 : index
    %3 = vector.load %arg3[%c0_3, %c0_4] : memref<1x128xf32, #tpu.memory_space<vmem>>, vector<1x128xf32>
    %4 = vector.broadcast %3 : vector<1x128xf32> to vector<8x128xf32>
    %5 = arith.addf %2, %4 : vector<8x128xf32>
    %6 = math.tanh %5 : vector<8x128xf32>
    %c0_5 = arith.constant 0 : index
    %c0_6 = arith.constant 0 : index
    %7 = vector.load %arg7[%c0_5, %c0_6] : memref<8x128xf32, #tpu.memory_space<vmem>>, vector<8x128xf32>
    tpu.vector_store %arg7[%c0_5, %c0_6], %6 {strides = array<i32>} : memref<8x128xf32, #tpu.memory_space<vmem>>, vector<8x128xf32>,
    %c0_7 = arith.constant 0 : index
    %c0_8 = arith.constant 0 : index
    %8 = vector.load %arg4[%c0_7, %c0_8] : memref<128x128xf32, #tpu.memory_space<vmem>>, vector<128x128xf32>
    %cst_9 = arith.constant dense<0.000000e+00> : vector<8x128xf32>
    %9 = tpu.matmul %6, %8, %cst_9 {dimension_numbers = #tpu.dot_dimension_numbers<[1], [1], [0], [0], [0, 0, 1, 0], [], []>} : vector<8x128xf32>, vector<128x128xf32>, vector<8x128xf32> -> vector<8x128xf32>
    %c0_10 = arith.constant 0 : index
    %c0_11 = arith.constant 0 : index
    %10 = vector.load %arg5[%c0_10, %c0_11] : memref<1x128xf32, #tpu.memory_space<vmem>>, vector<1x128xf32>
    %11 = vector.broadcast %10 : vector<1x128xf32> to vector<8x128xf32>
    %12 = arith.addf %9, %11 : vector<8x128xf32>
    %c0_12 = arith.constant 0 : index
    %c0_13 = arith.constant 0 : index
    %13 = vector.load %arg6[%c0_12, %c0_13] : memref<8x128xf32, #tpu.memory_space<vmem>>, vector<8x128xf32>
    tpu.vector_store %arg6[%c0_12, %c0_13], %12 {strides = array<i32>} : memref<8x128xf32, #tpu.memory_space<vmem>>, vector<8x128xf32>,
    return
  }
  func.func @transform_0(%arg0: i32) -> (i32, i32) {
    %c0_i32 = arith.constant 0 : i32
    %c0_i32_0 = arith.constant 0 : i32
    return %arg0, %c0_i32 : i32, i32
  }
  func.func @transform_1(%arg0: i32) -> (i32, i32) {
    %c0_i32 = arith.constant 0 : i32
    %c0_i32_0 = arith.constant 0 : i32
    %c0_i32_1 = arith.constant 0 : i32
    return %c0_i32, %c0_i32_0 : i32, i32
  }
  func.func @transform_2(%arg0: i32) -> (i32, i32) {
    %c0_i32 = arith.constant 0 : i32
    %c0_i32_0 = arith.constant 0 : i32
    %c0_i32_1 = arith.constant 0 : i32
    return %c0_i32, %c0_i32_0 : i32, i32
  }
  func.func @transform_3(%arg0: i32) -> (i32, i32) {
    %c0_i32 = arith.constant 0 : i32
    %c0_i32_0 = arith.constant 0 : i32
    %c0_i32_1 = arith.constant 0 : i32
    return %c0_i32, %c0_i32_0 : i32, i32
  }
  func.func @transform_4(%arg0: i32) -> (i32, i32) {
    %c0_i32 = arith.constant 0 : i32
    %c0_i32_0 = arith.constant 0 : i32
    %c0_i32_1 = arith.constant 0 : i32
    return %c0_i32, %c0_i32_0 : i32, i32
  }
  func.func @transform_5(%arg0: i32) -> (i32, i32) {
    %c0_i32 = arith.constant 0 : i32
    %c0_i32_0 = arith.constant 0 : i32
    return %arg0, %c0_i32 : i32, i32
  }
  func.func @transform_6(%arg0: i32) -> (i32, i32) {
    %c0_i32 = arith.constant 0 : i32
    %c0_i32_0 = arith.constant 0 : i32
    return %arg0, %c0_i32 : i32, i32
  }
}

</mosaic_0001>

<bundles_post_ra>
// kernel: naive_autoencoder_forward.1
= control target key start
LH: loop header
LB: loop body
LE: loop exit
PB: predicated region body
PF: predicated region fallthrough
CT: control target
= control target key end

     0   :  { %12 = vsyncpa [#allocation3], 0  ;;  %v451_v2 = vmov 0.0|0.0   ;;  %vm452_vm0 = vmmov 0   ;;  %v453_v4 = vmov 0.0   ;;  %s636_s0 = inlined_call_operand.vmem [shape: f32[8,128], index: 0, kind: input, shape index: {}]   ;;  %s637_s1 = inlined_call_operand.vmem [shape: f32[128,128], index: 1, kind: input, shape index: {}]   ;;  %s638_s2 = inlined_call_operand.vmem [shape: f32[1,128], index: 2, kind: input, shape index: {}]   ;;  %s639_s3 = inlined_call_operand.vmem [shape: f32[128,128], index: 3, kind: input, shape index: {}]   ;;  %s640_s4 = inlined_call_operand.vmem [shape: f32[1,128], index: 4, kind: input, shape index: {}]   ;;  %s641_s5 = inlined_call_operand.hbm [shape: f32[8,128], index: 5, kind: output, shape index: {0}]   ;;  %s642_s6 = inlined_call_operand.hbm [shape: f32[8,128], index: 6, kind: output, shape index: {1}]  }
   0x1   :  { %v25_v0 = vld [vmem:[%s637_s1] sm:$0xff]  ;;  %v26_v1 = vld [vmem:[%s637_s1 + $0x8] sm:$0xff]  ;;  %348 = vmatprep.subr.bf16.mxu0 %v451_v2  ;;  %310 = vmatprep.mubr.msk.f32.mxu0 %vm452_vm0, %v453_v4  ;;  %v27_v5 = vld [vmem:[%s637_s1 + $0x10] sm:$0xff] }
   0x2   :  { %v349_v3 = vpack.c.bf16 %v26_v1, %v25_v0  ;;  %372 = vmatprep.subr.bf16.mxu1 %v451_v2  ;;  %345 = vmatprep.mubr.msk.f32.mxu1 %vm452_vm0, %v453_v4  ;;  %v28_v6 = vld [vmem:[%s637_s1 + $0x18] sm:$0xff]  ;;  %v120_v7 = vld [vmem:[%s639_s3] sm:$0xff]  ;;  %v121_v8 = vld [vmem:[%s639_s3 + $0x8] sm:$0xff] }
   0x3   :  { %v352_v9 = vpack.c.bf16 %v28_v6, %v27_v5  ;;  %v373_v10 = vpack.c.bf16 %v121_v8, %v120_v7  ;;  %v122_v11 = vld [vmem:[%s639_s3 + $0x10] sm:$0xff]  ;;  %v123_v12 = vld [vmem:[%s639_s3 + $0x18] sm:$0xff] }
   0x4   :  { %350 = vmatpush3.bf16.xpose.msra.mxu0 %v349_v3 }
   0x5   :  { %351 = vmatprep.subr.bf16.mxu0 %v451_v2  ;;  %374 = vmatpush3.bf16.xpose.msra.mxu1 %v373_v10 }
   0x6   :  { %375 = vmatprep.subr.bf16.mxu1 %v451_v2 }
   0x7   :  { %13 = vsyncpa [#allocation5], 0  ;;  %v29_v13 = vld [vmem:[%s637_s1 + $0x20] sm:$0xff]  ;;  %v30_v14 = vld [vmem:[%s637_s1 + $0x28] sm:$0xff]  ;;  %v376_v15 = vpack.c.bf16 %v123_v12, %v122_v11 }
   0x8   :  { %v355_v16 = vpack.c.bf16 %v30_v14, %v29_v13  ;;  %v124_v17 = vld [vmem:[%s639_s3 + $0x20] sm:$0xff]  ;;  %v125_v18 = vld [vmem:[%s639_s3 + $0x28] sm:$0xff]  ;;  %v31_v19 = vld [vmem:[%s637_s1 + $0x30] sm:$0xff] }
   0x9   :  { %v32_v20 = vld [vmem:[%s637_s1 + $0x38] sm:$0xff]  ;;  %v379_v21 = vpack.c.bf16 %v125_v18, %v124_v17  ;;  %v126_v23 = vld [vmem:[%s639_s3 + $0x30] sm:$0xff]  ;;  %v33_v25 = vld [vmem:[%s637_s1 + $0x40] sm:$0xff] }
   0xa   :  { %v358_v22 = vpack.c.bf16 %v32_v20, %v31_v19  ;;  %v127_v24 = vld [vmem:[%s639_s3 + $0x38] sm:$0xff]  ;;  %v34_v26 = vld [vmem:[%s637_s1 + $0x48] sm:$0xff]  ;;  %v128_v29 = vld [vmem:[%s639_s3 + $0x40] sm:$0xff] }
   0xb   :  { %v382_v27 = vpack.c.bf16 %v127_v24, %v126_v23  ;;  %v361_v28 = vpack.c.bf16 %v34_v26, %v33_v25  ;;  %v129_v30 = vld [vmem:[%s639_s3 + $0x48] sm:$0xff]  ;;  %v35_v31 = vld [vmem:[%s637_s1 + $0x50] sm:$0xff]  ;;  %v36_v32 = vld [vmem:[%s637_s1 + $0x58] sm:$0xff] }
   0xc   :  { %353 = vmatpush3.bf16.xpose.msra.mxu0 %v352_v9  ;;  %v385_v33 = vpack.c.bf16 %v129_v30, %v128_v29  ;;  %v364_v34 = vpack.c.bf16 %v36_v32, %v35_v31  ;;  %v130_v35 = vld [vmem:[%s639_s3 + $0x50] sm:$0xff]  ;;  %v131_v36 = vld [vmem:[%s639_s3 + $0x58] sm:$0xff]  ;;  %v37_v37 = vld [vmem:[%s637_s1 + $0x60] sm:$0xff] }
   0xd   :  { %354 = vmatprep.subr.bf16.mxu0 %v451_v2  ;;  %377 = vmatpush3.bf16.xpose.msra.mxu1 %v376_v15  ;;  %v38_v38 = vld [vmem:[%s637_s1 + $0x68] sm:$0xff]  ;;  %v388_v39 = vpack.c.bf16 %v131_v36, %v130_v35  ;;  %v132_v41 = vld [vmem:[%s639_s3 + $0x60] sm:$0xff]  ;;  %v39_v43 = vld [vmem:[%s637_s1 + $0x70] sm:$0xff] }
   0xe   :  { %378 = vmatprep.subr.bf16.mxu1 %v451_v2  ;;  %v367_v40 = vpack.c.bf16 %v38_v38, %v37_v37  ;;  %v133_v42 = vld [vmem:[%s639_s3 + $0x68] sm:$0xff]  ;;  %v40_v44 = vld [vmem:[%s637_s1 + $0x78] sm:$0xff]  ;;  %v24_v47 = vld [vmem:[%s636_s0] sm:$0xff]  ;;  %s454_s0 = smov [#allocation4]  }
   0xf   :  { %v391_v45 = vpack.c.bf16 %v133_v42, %v132_v41  ;;  %v370_v46 = vpack.c.bf16 %v40_v44, %v39_v43  ;;  %v134_v48 = vld [vmem:[%s639_s3 + $0x70] sm:$0xff]  ;;  %v135_v49 = vld [vmem:[%s639_s3 + $0x78] sm:$0xff]  ;;  %v242_v51 = vld [vmem:[%s638_s2] ss:$0 sm:$0xff]  ;;  %s230_s16 = sshll.u32 %s454_s0, 4  ;;  %s231_s16 = int_to_ptr.vmem [resolvable:$true] %s230_s16 }
  0x10   :  { %v394_v50 = vpack.c.bf16 %v135_v49, %v134_v48  ;;  %s403_s17 = scalar_lea.vmem %s231_s16, 128  ;;  %p408_p1 = scmp.lt.s32.totalorder %s231_s16, %s231_s16 }
  0x11   :  { %p404_p0 = scmp.ne.s32.totalorder %s231_s16, %s403_s17  ;;  %p409_p2 = scmp.lt.s32.totalorder %s403_s17, %s403_s17 }
  0x13   :  { %p410_p3 = por %p409_p2, %p408_p1 }
  0x14   :  { %356 = vmatpush3.bf16.xpose.msra.mxu0 %v355_v16 }
  0x15   :  { %357 = vmatprep.subr.bf16.mxu0 %v451_v2  ;;  %380 = vmatpush3.bf16.xpose.msra.mxu1 %v379_v21  ;;  %p411_p4 = pnand %p410_p3, %p404_p0 }
  0x16   :  { %381 = vmatprep.subr.bf16.mxu1 %v451_v2 }
  0x1c   :  { %359 = vmatpush3.bf16.xpose.msra.mxu0 %v358_v22 }
  0x1d   :  { %360 = vmatprep.subr.bf16.mxu0 %v451_v2  ;;  %383 = vmatpush3.bf16.xpose.msra.mxu1 %v382_v27 }
  0x1e   :  { %384 = vmatprep.subr.bf16.mxu1 %v451_v2 }
  0x24   :  { %362 = vmatpush3.bf16.xpose.msra.mxu0 %v361_v28 }
  0x25   :  { %363 = vmatprep.subr.bf16.mxu0 %v451_v2  ;;  %386 = vmatpush3.bf16.xpose.msra.mxu1 %v385_v33 }
  0x26   :  { %387 = vmatprep.subr.bf16.mxu1 %v451_v2 }
  0x2c   :  { %365 = vmatpush3.bf16.xpose.msra.mxu0 %v364_v34 }
  0x2d   :  { %366 = vmatprep.subr.bf16.mxu0 %v451_v2  ;;  %389 = vmatpush3.bf16.xpose.msra.mxu1 %v388_v39 }
  0x2e   :  { %390 = vmatprep.subr.bf16.mxu1 %v451_v2 }
  0x34   :  { %368 = vmatpush3.bf16.xpose.msra.mxu0 %v367_v40 }
  0x35   :  { %369 = vmatprep.subr.bf16.mxu0 %v451_v2  ;;  %392 = vmatpush3.bf16.xpose.msra.mxu1 %v391_v45 }
  0x36   :  { %393 = vmatprep.subr.bf16.mxu1 %v451_v2 }
  0x3c   :  { %371 = vmatpush3.bf16.xpose.msra.mxu0 %v370_v46 }
  0x3d   :  { %395 = vmatpush3.bf16.xpose.msra.mxu1 %v394_v50 }
  0x43   :  { %311 = vmatmul.mubr.f32.vlgmr.msra.gmra.mrb[0].mxu0 %v24_v47 }
 0x116   :  { %v114_v52 = vpop.f32.mrb[0].mxu0 }
 0x117   :  { %v115_v53 = vadd.f32 %v242_v51, %v114_v52  ;;  %v312_v54 = vpop.f32.mrb[1].mxu0 }
 0x119   :  { %401 = vtanh.f32 %v115_v53 }
 0x123   :  { %v402_v55 = vpop.eup %401 }
 0x124   :  { %119 = vst [vmem:[#allocation4] sm:$0xff] %v402_v55  ;;  %346 = vmatmul.mubr.f32.vlgmr.msra.gmra.mrb[0].mxu1 %v402_v55 }
 0x125   :  { %414 = shalt.err (!%p411_p4)
}
 0x126   :  { %s415_s2 = scalar_lea.hbm %s642_s6, 128 }
 0x127   :  { %p416_p5 = scmp.ne.s32.totalorder %s642_s6, %s415_s2  ;;  %p419_p6 = scmp.lt.u32.totalorder %s415_s2, %s642_s6 }
 0x129   :  { %p421_p7 = pnand %p419_p6, %p416_p5 }
 0x12b   :  { %424 = shalt.err (!%p421_p7)
}
 0x12c   :  { %233 = dma.vmem_to_hbm [thread:$0]  %s231_s16, 128, %s642_s6, [#allocation5]   ;;  %v243_v56 = vld [vmem:[%s640_s4] ss:$0 sm:$0xff] }
 0x12d   :  { %s455_s27 = smov [#allocation2]  }
 0x12e   :  { %s220_s28 = sshll.u32 %s455_s27, 4  ;;  %s221_s28 = int_to_ptr.vmem [resolvable:$true] %s220_s28 }
 0x12f   :  { %s425_s29 = scalar_lea.vmem %s221_s28, 128  ;;  %p430_p9 = scmp.lt.s32.totalorder %s221_s28, %s221_s28 }
 0x130   :  { %p426_p8 = scmp.ne.s32.totalorder %s221_s28, %s425_s29  ;;  %p431_p10 = scmp.lt.s32.totalorder %s425_s29, %s425_s29 }
 0x132   :  { %p432_p11 = por %p431_p10, %p430_p9 }
 0x134   :  { %p433_p12 = pnand %p432_p11, %p426_p8 }
 0x1f7   :  { %v209_v57 = vpop.f32.mrb[0].mxu1 }
 0x1f8   :  { %v210_v58 = vadd.f32 %v243_v56, %v209_v57  ;;  %v347_v59 = vpop.f32.mrb[1].mxu1 }
 0x1fa   :  { %213 = vst [vmem:[#allocation2] sm:$0xff] %v210_v58 }
 0x1fb   :  { %436 = shalt.err (!%p433_p12)
}
 0x1fc   :  { %s437_s7 = scalar_lea.hbm %s641_s5, 128 }
 0x1fd   :  { %p438_p13 = scmp.ne.s32.totalorder %s641_s5, %s437_s7  ;;  %p441_p0 = scmp.lt.u32.totalorder %s437_s7, %s641_s5 }
 0x1ff   :  { %p443_p1 = pnand %p441_p0, %p438_p13 }
 0x201   :  { %446 = shalt.err (!%p443_p1)
}
 0x202   :  { %223 = dma.vmem_to_hbm [thread:$0]  %s221_s28, 128, %s641_s5, [#allocation3]  }
 0x203   :  { %447 = dma.done.wait [#allocation3], 128  }
 0x204   :  { %448 = vsyncadd [#allocation3], 4294967168 }
 0x205   :  { %449 = dma.done.wait [#allocation5], 128  }
 0x206   :  { %450 = vsyncadd [#allocation5], 4294967168 }
 0x207   :  { %240 = vsyncpa [#allocation3], 1 }
 0x208   :  { %241 = vsyncpa [#allocation5], 1 }

</bundles_post_ra>
